<compile_context>
chip_gen: v7x
topology: tpu7x:2x2x1
jax: 0.10.0
libtpu: 0.0.40
codegen_flags: <defaults>
</compile_context>

<pallas_src>
from functools import partial

import jax
import jax.numpy as jnp
from jax.experimental import pallas as pl
from jax.experimental.pallas import tpu as pltpu


def _round_up(x, m):
    return (x + m - 1) // m * m


# --------------------------------------------------------------------------- #
# In-kernel helpers (traced inside the Pallas body).
# --------------------------------------------------------------------------- #
def _init_scratch(m_ref, l_ref, psum_ref, pcnt_ref):
    m_ref[...] = jnp.full_like(m_ref, -jnp.inf)
    l_ref[...] = jnp.zeros_like(l_ref)
    psum_ref[...] = jnp.zeros_like(psum_ref)
    pcnt_ref[...] = jnp.zeros_like(pcnt_ref)


def _online_step(adc, lmask, psum_inc, pcnt_inc, m_ref, l_ref, psum_ref, pcnt_ref):
    """One streamed contrast tile of the online softmax denominator."""
    m_old = m_ref[...]
    # No col_valid guard needed: padded columns contribute adc == 0, a valid
    # upper-bound shift that cancels exactly in log_prob.
    m_new = jnp.maximum(m_old, jnp.max(adc, axis=1, keepdims=True))
    l_ref[...] = (l_ref[...] * jnp.exp(m_old - m_new)
                  + jnp.sum(jnp.where(lmask, jnp.exp(adc - m_new), 0.0),
                            axis=1, keepdims=True))
    psum_ref[...] += psum_inc
    pcnt_ref[...] += pcnt_inc
    m_ref[...] = m_new


def _finalize(loss_ref, m_ref, l_ref, psum_ref, pcnt_ref, loss_scale):
    log_denom = m_ref[...] + jnp.log(l_ref[...])
    # NOTE: rows with zero positives give 0/0 = NaN (same hazard as the
    # PyTorch original); padded anchor rows hit this too and are excluded by
    # the row_losses[:A] slice in the wrapper before the mean.
    mean_log_prob_pos = psum_ref[...] / pcnt_ref[...] - log_denom
    loss_ref[...] = loss_scale * mean_log_prob_pos


def _masks_from_ids(i, j, ta, tn, n_valid):
    """Vector iotas; compares broadcast lazily to [TA, TN] booleans."""
    row_ids = i * ta + jax.lax.broadcasted_iota(jnp.int32, (ta, 1), 0)
    col_ids = j * tn + jax.lax.broadcasted_iota(jnp.int32, (1, tn), 1)
    lmask = (col_ids < n_valid) & (row_ids != col_ids)   # drop pad + self
    return lmask


def _scaled_logits(anchor_ref, contrast_ref, inv_temperature):
    # MXU matmul contracting the last dim of both operands (no explicit .T),
    # bf16 operands, f32 accumulation.
    adc = jax.lax.dot_general(
        anchor_ref[...], contrast_ref[...],
        dimension_numbers=(((1,), (1,)), ((), ())),
        preferred_element_type=jnp.float32)
    return adc * inv_temperature                          # [TA, TN] f32


# --------------------------------------------------------------------------- #
# Kernels.
# --------------------------------------------------------------------------- #
def _supcon_labels_kernel(anchor_lab_ref, contrast_lab_ref, anchor_ref,
                          contrast_ref, loss_ref,
                          m_ref, l_ref, psum_ref, pcnt_ref, *,
                          inv_temperature, loss_scale, n_valid):
    """Hot path: positives mask built in-kernel from int32 label vectors."""
    i = pl.program_id(0)
    j = pl.program_id(1)
    ta = anchor_ref.shape[0]
    tn = contrast_ref.shape[0]

    @pl.when(j == 0)
    def _():
        _init_scratch(m_ref, l_ref, psum_ref, pcnt_ref)

    lmask = _masks_from_ids(i, j, ta, tn, n_valid)                    # bool
    pmask = (anchor_lab_ref[...] == contrast_lab_ref[...]) & lmask    # bool

    adc = _scaled_logits(anchor_ref, contrast_ref, inv_temperature)

    psum_inc = jnp.sum(jnp.where(pmask, adc, 0.0), axis=1, keepdims=True)
    pcnt_inc = jnp.sum(jnp.where(pmask, 1.0, 0.0), axis=1, keepdims=True)
    _online_step(adc, lmask, psum_inc, pcnt_inc, m_ref, l_ref, psum_ref, pcnt_ref)

    @pl.when(j == pl.num_programs(1) - 1)
    def _():
        _finalize(loss_ref, m_ref, l_ref, psum_ref, pcnt_ref, loss_scale)


def _supcon_mask_kernel(mask_ref, anchor_ref, contrast_ref, loss_ref,
                        m_ref, l_ref, psum_ref, pcnt_ref, *,
                        inv_temperature, loss_scale, n_valid):
    """Fallback: caller supplied an explicit (possibly asymmetric) mask."""
    i = pl.program_id(0)
    j = pl.program_id(1)
    ta = anchor_ref.shape[0]
    tn = contrast_ref.shape[0]

    @pl.when(j == 0)
    def _():
        _init_scratch(m_ref, l_ref, psum_ref, pcnt_ref)

    lmask = _masks_from_ids(i, j, ta, tn, n_valid)
    adc = _scaled_logits(anchor_ref, contrast_ref, inv_temperature)

    # Preserve the original's weighted-mask semantics (mask need not be 0/1).
    w = jnp.where(lmask, mask_ref[...].astype(jnp.float32), 0.0)
    psum_inc = jnp.sum(w * adc, axis=1, keepdims=True)
    pcnt_inc = jnp.sum(w, axis=1, keepdims=True)
    _online_step(adc, lmask, psum_inc, pcnt_inc, m_ref, l_ref, psum_ref, pcnt_ref)

    @pl.when(j == pl.num_programs(1) - 1)
    def _():
        _finalize(loss_ref, m_ref, l_ref, psum_ref, pcnt_ref, loss_scale)


# --------------------------------------------------------------------------- #
# Wrapper.
# --------------------------------------------------------------------------- #
def _choose_tiles(A, N, d_pad, block_a, block_n, with_mask,
                  vmem_budget=32 * 1024 * 1024):
    """Pick (TA, TN) so the per-step working set fits a generation-safe budget."""
    ta = max(16, min(_round_up(block_a, 16), _round_up(A, 16)))
    tn_full = _round_up(N, 128)
    if block_n is None:
        tn = tn_full
    else:
        tn = max(128, min(_round_up(block_n, 128), tn_full))

    def footprint(ta, tn):
        anchor = 2 * ta * d_pad * 2                  # bf16 anchor tile, 2 bufs
        contrast = 2 * tn * d_pad * 2                # bf16 contrast tile, 2 bufs
        labels = 2 * (ta * 128 + 128 + tn) * 4       # int32 label blocks (lane-padded)
        mask = (2 * ta * tn * 2) if with_mask else 0
        work = 2 * ta * tn * 4                       # adc + one fused f32 working tile
        scratch = 4 * ta * 128 * 4                   # m / l / pos_sum / pos_cnt
        out = 2 * ta * 128 * 4
        return anchor + contrast + labels + mask + work + scratch + out

    # Shrink the contrast tile first (it streams over the 2nd grid axis),
    # then the anchor tile.
    while footprint(ta, tn) > vmem_budget and tn > 512:
        tn = _round_up(tn // 2, 128)
    while footprint(ta, tn) > vmem_budget and ta > 32:
        ta = _round_up(ta // 2, 16)
    return ta, tn, footprint(ta, tn)


def supcon_loss(features, labels=None, mask=None, *,
                temperature=0.07, contrast_mode='all', base_temperature=0.07,
                block_a=256, block_n=None):
    """JAX/Pallas implementation of SupConLoss.forward (forward only)."""
    features = jnp.asarray(features)
    if features.ndim < 3:
        raise ValueError('`features` needs to be [bsz, n_views, ...]')
    if features.ndim > 3:
        features = features.reshape(features.shape[0], features.shape[1], -1)
    if labels is not None and mask is not None:
        raise ValueError('Cannot define both `labels` and `mask`')

    bsz, n_views, dim = features.shape
    contrast_count = n_views

    # torch.cat(torch.unbind(features, dim=1), dim=0)  (view-major order)
    contrast_feature = jnp.transpose(features, (1, 0, 2)).reshape(
        n_views * bsz, dim)

    if contrast_mode == 'one':
        anchor_feature = features[:, 0]
        anchor_count = 1
    elif contrast_mode == 'all':
        anchor_feature = contrast_feature
        anchor_count = contrast_count
    else:
        raise ValueError(f'Unknown mode: {contrast_mode}')

    A = anchor_count * bsz
    N = contrast_count * bsz
    d_pad = _round_up(dim, 128)

    ta, tn, footprint = _choose_tiles(A, N, d_pad, block_a, block_n,
                                      with_mask=mask is not None)
    a_pad = _round_up(A, ta)
    n_pad = _round_up(N, tn)
    grid = (a_pad // ta, n_pad // tn)

    # bf16 MXU operands, f32 accumulation inside the kernel.  In 'all' mode the
    # identical padded buffer is used for both operands (one pad/cast, one copy).
    if contrast_mode == 'all':
        rows_pad = max(a_pad, n_pad)
        contrast_p = jnp.pad(contrast_feature,
                             ((0, rows_pad - N), (0, d_pad - dim))
                             ).astype(jnp.bfloat16)
        anchor_p = contrast_p
    else:
        contrast_p = jnp.pad(contrast_feature,
                             ((0, n_pad - N), (0, d_pad - dim))
                             ).astype(jnp.bfloat16)
        anchor_p = jnp.pad(anchor_feature,
                           ((0, a_pad - A), (0, d_pad - dim))
                           ).astype(jnp.bfloat16)

    inv_temperature = 1.0 / float(temperature)
    loss_scale = -(float(temperature) / float(base_temperature))

    # Explicit scoped-VMEM limit (defaults: 16 MiB v5e / 32 MiB v6e+) sized to
    # the measured per-step footprint, kept well under v7x's 64 MiB physical.
    vmem_limit_bytes = int(min(max(footprint + (16 << 20), 32 << 20), 56 << 20))
    compiler_params = pltpu.CompilerParams(
        dimension_semantics=("parallel", "arbitrary"),
        vmem_limit_bytes=vmem_limit_bytes)

    out_shape = jax.ShapeDtypeStruct((a_pad, 1), jnp.float32)
    out_spec = pl.BlockSpec((ta, 1), lambda i, j: (i, 0))
    anchor_spec = pl.BlockSpec((ta, d_pad), lambda i, j: (i, 0))
    contrast_spec = pl.BlockSpec((tn, d_pad), lambda i, j: (j, 0))
    scratch = [pltpu.VMEM((ta, 1), jnp.float32) for _ in range(4)]

    if mask is None:
        if labels is None:
            # SimCLR degenerate case: identity mask == label equality of arange.
            lab = jnp.arange(bsz, dtype=jnp.int32)
        else:
            lab = jnp.asarray(labels).reshape(-1).astype(jnp.int32)
            if lab.shape[0] != bsz:
                raise ValueError('Num of labels does not match num of features')
        contrast_labels = jnp.tile(lab, contrast_count)                    # [N]
        anchor_labels = lab if anchor_count == 1 else contrast_labels      # [A]
        anchor_lab = jnp.pad(anchor_labels, (0, a_pad - A),
                             constant_values=-1).reshape(a_pad, 1)
        contrast_lab = jnp.pad(contrast_labels, (0, n_pad - N),
                               constant_values=-1).reshape(1, n_pad)

        kernel = partial(_supcon_labels_kernel,
                         inv_temperature=inv_temperature,
                         loss_scale=loss_scale, n_valid=N)
        row_losses = pl.pallas_call(
            kernel,
            out_shape=out_shape,
            grid=grid,
            in_specs=[
                pl.BlockSpec((ta, 1), lambda i, j: (i, 0)),    # anchor labels
                pl.BlockSpec((1, tn), lambda i, j: (0, j)),    # contrast labels
                anchor_spec,
                contrast_spec,
            ],
            out_specs=out_spec,
            scratch_shapes=scratch,
            compiler_params=compiler_params,
        )(anchor_lab, contrast_lab, anchor_p, contrast_p)
    else:
        # Explicit-mask fallback: tile across views once, in bf16 (not f32), to
        # keep HBM traffic low while preserving the original semantics.
        # TODO(synk): for very large bsz, replicate the [bsz,bsz] mask in-kernel
        # instead of tiling it in the wrapper.
        mask = jnp.asarray(mask).astype(jnp.bfloat16)
        mask_tiled = jnp.tile(mask, (anchor_count, contrast_count))        # [A, N]
        mask_tiled = jnp.pad(mask_tiled, ((0, a_pad - A), (0, n_pad - N)))
        kernel = partial(_supcon_mask_kernel,
                         inv_temperature=inv_temperature,
                         loss_scale=loss_scale, n_valid=N)
        row_losses = pl.pallas_call(
            kernel,
            out_shape=out_shape,
            grid=grid,
            in_specs=[
                pl.BlockSpec((ta, tn), lambda i, j: (i, j)),   # tiled mask (bf16)
                anchor_spec,
                contrast_spec,
            ],
            out_specs=out_spec,
            scratch_shapes=scratch,
            compiler_params=compiler_params,
        )(mask_tiled, anchor_p, contrast_p)

    # Tiny final mean over the A real anchor rows (padded rows sliced off).
    return jnp.mean(row_losses[:A, 0])


# --------------------------------------------------------------------------- #
# Pure-JAX reference (mirrors the PyTorch code, contrast_mode='all').
# --------------------------------------------------------------------------- #
def _supcon_ref(features, labels=None, *,
                temperature=0.07, base_temperature=0.07):
    bsz, n_views, dim = features.shape
    if labels is None:
        mask = jnp.eye(bsz, dtype=jnp.float32)
    else:
        labels = labels.reshape(-1, 1)
        mask = (labels == labels.T).astype(jnp.float32)
    contrast_feature = jnp.transpose(features, (1, 0, 2)).reshape(n_views * bsz, dim)
    anchor_feature = contrast_feature
    adc = (anchor_feature @ contrast_feature.T) / temperature
    logits = adc - jnp.max(adc, axis=1, keepdims=True)
    mask = jnp.tile(mask, (n_views, n_views))
    logits_mask = 1.0 - jnp.eye(n_views * bsz, dtype=jnp.float32)
    mask = mask * logits_mask
    exp_logits = jnp.exp(logits) * logits_mask
    log_prob = logits - jnp.log(jnp.sum(exp_logits, axis=1, keepdims=True))
    mean_log_prob_pos = jnp.sum(mask * log_prob, axis=1) / jnp.sum(mask, axis=1)
    loss = -(temperature / base_temperature) * mean_log_prob_pos
    return jnp.mean(loss)


if __name__ == "__main__":
    key = jax.random.PRNGKey(0)
    k1, k2, k3 = jax.random.split(key, 3)

    # ---- small test: bsz=8, n_views=2, dim=32 (single grid tile) ----------
    bsz, n_views, dim = 8, 2, 32
    feats = jax.random.normal(k1, (bsz, n_views, dim), dtype=jnp.float32)
    feats = feats / jnp.linalg.norm(feats, axis=-1, keepdims=True)  # L2-normalized
    labels = jnp.array([0, 1, 0, 1, 2, 2, 3, 3], dtype=jnp.int32)
    # Reference fed with the same bf16-rounded features the kernel gives the MXU.
    feats_bf = feats.astype(jnp.bfloat16).astype(jnp.float32)

    # Supervised (labels) path.
    loss = jax.block_until_ready(supcon_loss(feats, labels=labels))
    ref = _supcon_ref(feats_bf, labels=labels)
    assert jnp.isfinite(loss), loss
    assert jnp.allclose(loss, ref, atol=2e-3, rtol=2e-3), (loss, ref)

    # Unsupervised (SimCLR, labels=None) path — same optimized kernel.
    loss_simclr = jax.block_until_ready(supcon_loss(feats))
    ref_simclr = _supcon_ref(feats_bf, labels=None)
    assert jnp.allclose(loss_simclr, ref_simclr, atol=2e-3, rtol=2e-3), (
        loss_simclr, ref_simclr)

    # Explicit-mask fallback path (must agree with the labels path).
    mask = (labels[:, None] == labels[None, :]).astype(jnp.float32)
    loss_mask = jax.block_until_ready(supcon_loss(feats, mask=mask))
    assert jnp.allclose(loss_mask, loss, atol=1e-4, rtol=1e-4), (loss_mask, loss)

    # ---- multi-tile test: exercises the streamed contrast axis (grid 3x2) --
    bsz2, n_views2, dim2 = 96, 2, 160
    feats2 = jax.random.normal(k2, (bsz2, n_views2, dim2), dtype=jnp.float32)
    feats2 = feats2 / jnp.linalg.norm(feats2, axis=-1, keepdims=True)
    labels2 = jax.random.randint(k3, (bsz2,), 0, 4, dtype=jnp.int32)
    feats2_bf = feats2.astype(jnp.bfloat16).astype(jnp.float32)

    loss2 = jax.block_until_ready(
        supcon_loss(feats2, labels=labels2, block_a=64, block_n=128))
    ref2 = _supcon_ref(feats2_bf, labels=labels2)
    assert jnp.isfinite(loss2), loss2
    assert jnp.allclose(loss2, ref2, atol=2e-3, rtol=2e-3), (loss2, ref2)

    print("KERNEL_OK")
</pallas_src>

<mosaic_0001>
module attributes {stable_mosaic.version = 11 : i64} {
  func.func @_supcon_labels_kernel(%arg0: i32, %arg1: i32, %arg2: memref<16x1xi32, #tpu.memory_space<vmem>>, %arg3: memref<1x128xi32, #tpu.memory_space<vmem>>, %arg4: memref<16x128xbf16, #tpu.memory_space<vmem>>, %arg5: memref<128x128xbf16, #tpu.memory_space<vmem>>, %arg6: memref<16x1xf32, #tpu.memory_space<vmem>>, %arg7: memref<16x1xf32, #tpu.memory_space<vmem>>, %arg8: memref<16x1xf32, #tpu.memory_space<vmem>>, %arg9: memref<16x1xf32, #tpu.memory_space<vmem>>, %arg10: memref<16x1xf32, #tpu.memory_space<vmem>>) attributes {dimension_semantics = [#tpu.dimension_semantics<parallel>, #tpu.dimension_semantics<arbitrary>], iteration_bounds = array<i64: 1, 1>, scalar_prefetch = 0 : i64, scratch_operands = 4 : i64, tpu.core_type = #tpu.core_type<tc>, window_params = [{transform_indices = @transform_0, window_bounds = array<i64: 16, 1>}, {transform_indices = @transform_1, window_bounds = array<i64: 1, 128>}, {transform_indices = @transform_2, window_bounds = array<i64: 16, 128>}, {transform_indices = @transform_3, window_bounds = array<i64: 128, 128>}, {transform_indices = @transform_4, window_bounds = array<i64: 16, 1>}]} {
    %c0_i32 = arith.constant 0 : i32
    %0 = arith.cmpi eq, %arg1, %c0_i32 : i32
    %1 = arith.extui %0 : i1 to i32
    %c0_i32_0 = arith.constant 0 : i32
    %2 = arith.cmpi ne, %1, %c0_i32_0 : i32
    scf.if %2 {
      %cst_36 = arith.constant 0xFF800000 : f32
      %65 = vector.broadcast %cst_36 : f32 to vector<16x1xf32>
      %c0_37 = arith.constant 0 : index
      %c0_38 = arith.constant 0 : index
      %66 = vector.load %arg7[%c0_37, %c0_38] : memref<16x1xf32, #tpu.memory_space<vmem>>, vector<16x1xf32>
      tpu.vector_store %arg7[%c0_37, %c0_38], %65 {strides = array<i32>} : memref<16x1xf32, #tpu.memory_space<vmem>>, vector<16x1xf32>,
      %cst_39 = arith.constant 0.000000e+00 : f32
      %67 = vector.broadcast %cst_39 : f32 to vector<16x1xf32>
      %c0_40 = arith.constant 0 : index
      %c0_41 = arith.constant 0 : index
      %68 = vector.load %arg8[%c0_40, %c0_41] : memref<16x1xf32, #tpu.memory_space<vmem>>, vector<16x1xf32>
      tpu.vector_store %arg8[%c0_40, %c0_41], %67 {strides = array<i32>} : memref<16x1xf32, #tpu.memory_space<vmem>>, vector<16x1xf32>,
      %cst_42 = arith.constant 0.000000e+00 : f32
      %69 = vector.broadcast %cst_42 : f32 to vector<16x1xf32>
      %c0_43 = arith.constant 0 : index
      %c0_44 = arith.constant 0 : index
      %70 = vector.load %arg9[%c0_43, %c0_44] : memref<16x1xf32, #tpu.memory_space<vmem>>, vector<16x1xf32>
      tpu.vector_store %arg9[%c0_43, %c0_44], %69 {strides = array<i32>} : memref<16x1xf32, #tpu.memory_space<vmem>>, vector<16x1xf32>,
      %cst_45 = arith.constant 0.000000e+00 : f32
      %71 = vector.broadcast %cst_45 : f32 to vector<16x1xf32>
      %c0_46 = arith.constant 0 : index
      %c0_47 = arith.constant 0 : index
      %72 = vector.load %arg10[%c0_46, %c0_47] : memref<16x1xf32, #tpu.memory_space<vmem>>, vector<16x1xf32>
      tpu.vector_store %arg10[%c0_46, %c0_47], %71 {strides = array<i32>} : memref<16x1xf32, #tpu.memory_space<vmem>>, vector<16x1xf32>,
    } else {
    }
    %c16_i32 = arith.constant 16 : i32
    %3 = arith.muli %arg0, %c16_i32 : i32
    %4 = tpu.iota {dimensions = array<i32: 0>} : vector<16x1xi32>
    %5 = vector.broadcast %3 : i32 to vector<16x1xi32>
    %6 = arith.addi %5, %4 : vector<16x1xi32>
    %c128_i32 = arith.constant 128 : i32
    %7 = arith.muli %arg1, %c128_i32 : i32
    %8 = tpu.iota {dimensions = array<i32: 1>} : vector<1x128xi32>
    %9 = vector.broadcast %7 : i32 to vector<1x128xi32>
    %10 = arith.addi %9, %8 : vector<1x128xi32>
    %c16_i32_1 = arith.constant 16 : i32
    %11 = vector.broadcast %c16_i32_1 : i32 to vector<1x128xi32>
    %12 = arith.cmpi slt, %10, %11 : vector<1x128xi32>
    %13 = vector.broadcast %6 : vector<16x1xi32> to vector<16x128xi32>
    %14 = vector.broadcast %10 : vector<1x128xi32> to vector<16x128xi32>
    %15 = arith.cmpi ne, %13, %14 : vector<16x128xi32>
    %16 = vector.broadcast %12 : vector<1x128xi1> to vector<16x128xi1>
    %17 = arith.andi %16, %15 : vector<16x128xi1>
    %c0 = arith.constant 0 : index
    %c0_2 = arith.constant 0 : index
    %18 = vector.load %arg2[%c0, %c0_2] : memref<16x1xi32, #tpu.memory_space<vmem>>, vector<16x1xi32>
    %c0_3 = arith.constant 0 : index
    %c0_4 = arith.constant 0 : index
    %19 = vector.load %arg3[%c0_3, %c0_4] : memref<1x128xi32, #tpu.memory_space<vmem>>, vector<1x128xi32>
    %20 = vector.broadcast %18 : vector<16x1xi32> to vector<16x128xi32>
    %21 = vector.broadcast %19 : vector<1x128xi32> to vector<16x128xi32>
    %22 = arith.cmpi eq, %20, %21 : vector<16x128xi32>
    %23 = arith.andi %22, %17 : vector<16x128xi1>
    %c0_5 = arith.constant 0 : index
    %c0_6 = arith.constant 0 : index
    %24 = vector.load %arg4[%c0_5, %c0_6] : memref<16x128xbf16, #tpu.memory_space<vmem>>, vector<16x128xbf16>
    %c0_7 = arith.constant 0 : index
    %c0_8 = arith.constant 0 : index
    %25 = vector.load %arg5[%c0_7, %c0_8] : memref<128x128xbf16, #tpu.memory_space<vmem>>, vector<128x128xbf16>
    %cst = arith.constant dense<0.000000e+00> : vector<16x128xf32>
    %26 = tpu.matmul %24, %25, %cst {dimension_numbers = #tpu.dot_dimension_numbers<[1], [1], [0], [0], [0, 0, 1, 0], [], []>} : vector<16x128xbf16>, vector<128x128xbf16>, vector<16x128xf32> -> vector<16x128xf32>
    %cst_9 = arith.constant 14.2857141 : f32
    %27 = vector.broadcast %cst_9 : f32 to vector<16x128xf32>
    %28 = arith.mulf %26, %27 : vector<16x128xf32>
    %cst_10 = arith.constant 0.000000e+00 : f32
    %29 = vector.broadcast %cst_10 : f32 to vector<16x128xf32>
    %30 = arith.select %23, %28, %29 : vector<16x128xi1>, vector<16x128xf32>
    %cst_11 = arith.constant dense<0.000000e+00> : vector<16xf32>
    %31 = vector.multi_reduction <add>, %30, %cst_11 [1] : vector<16x128xf32> to vector<16xf32>
    %32 = vector.shape_cast %31 : vector<16xf32> to vector<16x1xf32>
    %cst_12 = arith.constant 1.000000e+00 : f32
    %cst_13 = arith.constant 0.000000e+00 : f32
    %33 = vector.broadcast %cst_12 : f32 to vector<16x128xf32>
    %34 = vector.broadcast %cst_13 : f32 to vector<16x128xf32>
    %35 = arith.select %23, %33, %34 : vector<16x128xi1>, vector<16x128xf32>
    %cst_14 = arith.constant dense<0.000000e+00> : vector<16xf32>
    %36 = vector.multi_reduction <add>, %35, %cst_14 [1] : vector<16x128xf32> to vector<16xf32>
    %37 = vector.shape_cast %36 : vector<16xf32> to vector<16x1xf32>
    %c0_15 = arith.constant 0 : index
    %c0_16 = arith.constant 0 : index
    %38 = vector.load %arg7[%c0_15, %c0_16] : memref<16x1xf32, #tpu.memory_space<vmem>>, vector<16x1xf32>
    %cst_17 = arith.constant dense<0xFF800000> : vector<16xf32>
    %39 = vector.multi_reduction <maximumf>, %28, %cst_17 [1] : vector<16x128xf32> to vector<16xf32>
    %40 = vector.shape_cast %39 : vector<16xf32> to vector<16x1xf32>
    %41 = arith.maximumf %38, %40 : vector<16x1xf32>
    %c0_18 = arith.constant 0 : index
    %c0_19 = arith.constant 0 : index
    %42 = vector.load %arg8[%c0_18, %c0_19] : memref<16x1xf32, #tpu.memory_space<vmem>>, vector<16x1xf32>
    %43 = arith.subf %38, %41 : vector<16x1xf32>
    %44 = math.exp %43 : vector<16x1xf32>
    %45 = arith.mulf %42, %44 : vector<16x1xf32>
    %46 = vector.broadcast %41 : vector<16x1xf32> to vector<16x128xf32>
    %47 = arith.subf %28, %46 : vector<16x128xf32>
    %48 = math.exp %47 : vector<16x128xf32>
    %cst_20 = arith.constant 0.000000e+00 : f32
    %49 = vector.broadcast %cst_20 : f32 to vector<16x128xf32>
    %50 = arith.select %17, %48, %49 : vector<16x128xi1>, vector<16x128xf32>
    %cst_21 = arith.constant dense<0.000000e+00> : vector<16xf32>
    %51 = vector.multi_reduction <add>, %50, %cst_21 [1] : vector<16x128xf32> to vector<16xf32>
    %52 = vector.shape_cast %51 : vector<16xf32> to vector<16x1xf32>
    %53 = arith.addf %45, %52 : vector<16x1xf32>
    %c0_22 = arith.constant 0 : index
    %c0_23 = arith.constant 0 : index
    %54 = vector.load %arg8[%c0_22, %c0_23] : memref<16x1xf32, #tpu.memory_space<vmem>>, vector<16x1xf32>
    tpu.vector_store %arg8[%c0_22, %c0_23], %53 {strides = array<i32>} : memref<16x1xf32, #tpu.memory_space<vmem>>, vector<16x1xf32>,
    %c0_24 = arith.constant 0 : index
    %c0_25 = arith.constant 0 : index
    %55 = vector.load %arg9[%c0_24, %c0_25] : memref<16x1xf32, #tpu.memory_space<vmem>>, vector<16x1xf32>
    %56 = arith.addf %55, %32 : vector<16x1xf32>
    %c0_26 = arith.constant 0 : index
    %c0_27 = arith.constant 0 : index
    %57 = vector.load %arg9[%c0_26, %c0_27] : memref<16x1xf32, #tpu.memory_space<vmem>>, vector<16x1xf32>
    tpu.vector_store %arg9[%c0_26, %c0_27], %56 {strides = array<i32>} : memref<16x1xf32, #tpu.memory_space<vmem>>, vector<16x1xf32>,
    %c0_28 = arith.constant 0 : index
    %c0_29 = arith.constant 0 : index
    %58 = vector.load %arg10[%c0_28, %c0_29] : memref<16x1xf32, #tpu.memory_space<vmem>>, vector<16x1xf32>
    %59 = arith.addf %58, %37 : vector<16x1xf32>
    %c0_30 = arith.constant 0 : index
    %c0_31 = arith.constant 0 : index
    %60 = vector.load %arg10[%c0_30, %c0_31] : memref<16x1xf32, #tpu.memory_space<vmem>>, vector<16x1xf32>
    tpu.vector_store %arg10[%c0_30, %c0_31], %59 {strides = array<i32>} : memref<16x1xf32, #tpu.memory_space<vmem>>, vector<16x1xf32>,
    %c0_32 = arith.constant 0 : index
    %c0_33 = arith.constant 0 : index
    %61 = vector.load %arg7[%c0_32, %c0_33] : memref<16x1xf32, #tpu.memory_space<vmem>>, vector<16x1xf32>
    tpu.vector_store %arg7[%c0_32, %c0_33], %41 {strides = array<i32>} : memref<16x1xf32, #tpu.memory_space<vmem>>, vector<16x1xf32>,
    %c0_i32_34 = arith.constant 0 : i32
    %62 = arith.cmpi eq, %arg1, %c0_i32_34 : i32
    %63 = arith.extui %62 : i1 to i32
    %c0_i32_35 = arith.constant 0 : i32
    %64 = arith.cmpi ne, %63, %c0_i32_35 : i32
    scf.if %64 {
      %c0_36 = arith.constant 0 : index
      %c0_37 = arith.constant 0 : index
      %65 = vector.load %arg7[%c0_36, %c0_37] : memref<16x1xf32, #tpu.memory_space<vmem>>, vector<16x1xf32>
      %c0_38 = arith.constant 0 : index
      %c0_39 = arith.constant 0 : index
      %66 = vector.load %arg8[%c0_38, %c0_39] : memref<16x1xf32, #tpu.memory_space<vmem>>, vector<16x1xf32>
      %67 = math.log %66 : vector<16x1xf32>
      %68 = arith.addf %65, %67 : vector<16x1xf32>
      %c0_40 = arith.constant 0 : index
      %c0_41 = arith.constant 0 : index
      %69 = vector.load %arg9[%c0_40, %c0_41] : memref<16x1xf32, #tpu.memory_space<vmem>>, vector<16x1xf32>
      %c0_42 = arith.constant 0 : index
      %c0_43 = arith.constant 0 : index
      %70 = vector.load %arg10[%c0_42, %c0_43] : memref<16x1xf32, #tpu.memory_space<vmem>>, vector<16x1xf32>
      %71 = arith.divf %69, %70 : vector<16x1xf32>
      %72 = arith.subf %71, %68 : vector<16x1xf32>
      %cst_44 = arith.constant -1.000000e+00 : f32
      %73 = vector.broadcast %cst_44 : f32 to vector<16x1xf32>
      %74 = arith.mulf %73, %72 : vector<16x1xf32>
      %c0_45 = arith.constant 0 : index
      %c0_46 = arith.constant 0 : index
      %75 = vector.load %arg6[%c0_45, %c0_46] : memref<16x1xf32, #tpu.memory_space<vmem>>, vector<16x1xf32>
      tpu.vector_store %arg6[%c0_45, %c0_46], %74 {strides = array<i32>} : memref<16x1xf32, #tpu.memory_space<vmem>>, vector<16x1xf32>,
    } else {
    }
    return
  }
  func.func @transform_0(%arg0: i32, %arg1: i32) -> (i32, i32) {
    %c0_i32 = arith.constant 0 : i32
    %c0_i32_0 = arith.constant 0 : i32
    return %arg0, %c0_i32 : i32, i32
  }
  func.func @transform_1(%arg0: i32, %arg1: i32) -> (i32, i32) {
    %c0_i32 = arith.constant 0 : i32
    %c0_i32_0 = arith.constant 0 : i32
    return %c0_i32, %arg1 : i32, i32
  }
  func.func @transform_2(%arg0: i32, %arg1: i32) -> (i32, i32) {
    %c0_i32 = arith.constant 0 : i32
    %c0_i32_0 = arith.constant 0 : i32
    return %arg0, %c0_i32 : i32, i32
  }
  func.func @transform_3(%arg0: i32, %arg1: i32) -> (i32, i32) {
    %c0_i32 = arith.constant 0 : i32
    %c0_i32_0 = arith.constant 0 : i32
    return %arg1, %c0_i32 : i32, i32
  }
  func.func @transform_4(%arg0: i32, %arg1: i32) -> (i32, i32) {
    %c0_i32 = arith.constant 0 : i32
    %c0_i32_0 = arith.constant 0 : i32
    return %arg0, %c0_i32 : i32, i32
  }
}

</mosaic_0001>

<bundles_post_ra>
// kernel: tpu_custom_call.1
= control target key start
LH: loop header
LB: loop body
LE: loop exit
PB: predicated region body
PF: predicated region fallthrough
CT: control target
= control target key end

     0   :  { %9 = vsyncpa [#allocation7], 0  ;;  %s564_s0 = inlined_call_operand.vmem [shape: s32[16,1], index: 0, kind: input, shape index: {}]   ;;  %s565_s1 = inlined_call_operand.vmem [shape: s32[1,128], index: 1, kind: input, shape index: {}]   ;;  %s566_s2 = inlined_call_operand.hbm [shape: bf16[128,128], index: 2, kind: input, shape index: {}]   ;;  %s567_s3 = inlined_call_operand.hbm [shape: bf16[128,128], index: 3, kind: input, shape index: {}]   ;;  %s568_s4 = inlined_call_operand.vmem [shape: f32[16,1], index: 4, kind: output, shape index: {}]  }
   0x1   :  { %10 = vsyncpa [#allocation9], 0  ;;  %s436_s15 = smov [#allocation6]   ;;  %s388_s19 = scalar_lea.hbm %s566_s2, 128 }
   0x2   :  { %s20_s16 = sshll.u32 %s436_s15, 4  ;;  %p389_p0 = scmp.ne.s32.totalorder %s566_s2, %s388_s19  ;;  %s21_s16 = int_to_ptr.vmem [resolvable:$true] %s20_s16 }
   0x3   :  { %s390_s24 = scalar_lea.hbm %s566_s2, 1024  ;;  %p392_p2 = scmp.lt.u32.totalorder %s388_s19, %s566_s2 }
   0x4   :  { %p391_p1 = scmp.lt.u32.totalorder %s390_s24, %s388_s19 }
   0x6   :  { %p393_p3 = por %p392_p2, %p391_p1 }
   0x8   :  { %p394_p4 = pnand %p393_p3, %p389_p0 }
   0xa   :  { %397 = shalt.err (!%p394_p4)
}
   0xb   :  { %s398_s27 = scalar_lea.vmem %s21_s16, 128  ;;  %p403_p6 = scmp.lt.s32.totalorder %s21_s16, %s21_s16 }
   0xc   :  { %p399_p5 = scmp.ne.s32.totalorder %s21_s16, %s398_s27  ;;  %p404_p7 = scmp.lt.s32.totalorder %s398_s27, %s398_s27 }
   0xe   :  { %p405_p8 = por %p404_p7, %p403_p6 }
  0x10   :  { %p406_p9 = pnand %p405_p8, %p399_p5 }
  0x12   :  { %409 = shalt.err (!%p406_p9)
}
  0x13   :  { %s437_s28 = smov 64   ;;  %s438_s29 = smov 4  }
  0x14   :  { %26 = dma.hbm_to_vmem [thread:$0]  %s566_s2, 128, %s21_s16, [#allocation7], %s437_s28, %s437_s28, %s438_s29  }
  0x15   :  { %s439_s6 = smov [#allocation8]   ;;  %s410_s10 = scalar_lea.hbm %s567_s3, 1024 }
  0x16   :  { %s32_s7 = sshll.u32 %s439_s6, 4  ;;  %p411_p10 = scmp.ne.s32.totalorder %s567_s3, %s410_s10  ;;  %s33_s7 = int_to_ptr.vmem [resolvable:$true] %s32_s7 }
  0x17   :  { %p414_p11 = scmp.lt.u32.totalorder %s410_s10, %s567_s3 }
  0x19   :  { %p416_p12 = pnand %p414_p11, %p411_p10 }
  0x1b   :  { %419 = shalt.err (!%p416_p12)
}
  0x1c   :  { %s420_s15 = scalar_lea.vmem %s33_s7, 1024  ;;  %p425_p0 = scmp.lt.s32.totalorder %s33_s7, %s33_s7 }
  0x1d   :  { %p421_p13 = scmp.ne.s32.totalorder %s33_s7, %s420_s15  ;;  %p426_p1 = scmp.lt.s32.totalorder %s420_s15, %s420_s15 }
  0x1f   :  { %p427_p2 = por %p426_p1, %p425_p0 }
  0x21   :  { %p428_p3 = pnand %p427_p2, %p421_p13 }
  0x23   :  { %431 = shalt.err (!%p428_p3)
}
  0x24   :  { %38 = dma.hbm_to_vmem [thread:$0]  %s567_s3, 1024, %s33_s7, [#allocation9], %s437_s28, %s437_s28, %s438_s29  }
  0x25   :  { %432 = dma.done.wait [#allocation7], 128  }
  0x26   :  { %433 = vsyncadd [#allocation7], 4294967168 }
  0x27   :  { %434 = dma.done.wait [#allocation9], 1024  }
  0x28   :  { %435 = vsyncadd [#allocation9], 4294966272  ;;  %v440_v0 = vmov 0.0   ;;  %vm441_vm0 = vmmov 0   ;;  %v363_v1 = vld [vmem:[#allocation8] sm:$0xff]   ;;  %v364_v2 = vld [vmem:[#allocation8 + $0x8] sm:$0xff]   ;;  %v60_v25 = vlaneseq }
  0x29   :  { %333 = vmatprep.subr.bf16.mxu0 %v440_v0  ;;  %349 = vmatprep.mubr.msk.bf16.mxu0 %vm441_vm0, %v440_v0  ;;  %v365_v3 = vld [vmem:[#allocation8 + $0x10] sm:$0xff]   ;;  %v366_v4 = vld [vmem:[#allocation8 + $0x18] sm:$0xff]   ;;  %v367_v5 = vld [vmem:[#allocation8 + $0x20] sm:$0xff]   ;;  %v442_v10 = vmov 0   ;;  %vm50_vm1 = vcmask 7168   ;;  %v443_v11 = vmov -inf  }
  0x2a   :  { %334 = vmatpush3.bf16.xpose.msra.mxu0 %v363_v1  ;;  %v368_v6 = vld [vmem:[#allocation8 + $0x28] sm:$0xff]   ;;  %v369_v7 = vld [vmem:[#allocation8 + $0x30] sm:$0xff]   ;;  %v370_v8 = vld [vmem:[#allocation8 + $0x38] sm:$0xff]   ;;  %362 = vset.pattern.permute.xlu0 %v442_v10  ;;  %51 = vst.msk [vmem:[#allocation2] sm:$0xff] %vm50_vm1, %v443_v11  ;;  %v61_v29 = vshrl.u32 %v60_v25, 7  ;;  %v68_v30 = vand.u32 127, %v60_v25 }
  0x2b   :  { %335 = vmatprep.subr.bf16.mxu0 %v440_v0  ;;  %v371_v9 = vld [vmem:[#allocation6] sm:$0xff]   ;;  %361 = vset.pattern.permute.xlu1 %v442_v10  ;;  %52 = vst.msk [vmem:[#allocation2 + $0x8] sm:$0xff] %vm50_vm1, %v443_v11  ;;  %53 = vst.msk [vmem:[#allocation3] sm:$0xff] %vm50_vm1, %v440_v0  ;;  %v79_v28 = vld [vmem:[%s564_s0 + $0x8] sm:$0xff] }
  0x2c   :  { %54 = vst.msk [vmem:[#allocation3 + $0x8] sm:$0xff] %vm50_vm1, %v440_v0  ;;  %55 = vst.msk [vmem:[#allocation4] sm:$0xff] %vm50_vm1, %v440_v0  ;;  %v78_v18 = vld [vmem:[%s564_s0] sm:$0xff]  ;;  %vm71_vm2 = vcmp.lt.s32.totalorder %v68_v30, 16  ;;  %vm72_vm3 = vcmp.ne.s32.totalorder %v61_v29, %v68_v30  ;;  %v62_v42 = vadd.s32 8, %v61_v29 }
  0x2d   :  { %56 = vst.msk [vmem:[#allocation4 + $0x8] sm:$0xff] %vm50_vm1, %v440_v0  ;;  %57 = vst.msk [vmem:[#allocation5] sm:$0xff] %vm50_vm1, %v440_v0  ;;  %v314_v31 = vld [vmem:[%s565_s1] ss:$0 sm:$0xff] }
  0x2e   :  { %58 = vst.msk [vmem:[#allocation5 + $0x8] sm:$0xff] %vm50_vm1, %v440_v0  ;;  %vm531_vm5 = vmand %vm71_vm2, %vm72_vm3  ;;  %vm73_vm7 = vcmp.ne.s32.totalorder %v62_v42, %v68_v30 }
  0x2f   :  { %vm77_vm9 = vmand %vm71_vm2, %vm73_vm7 }
  0x31   :  { %v222_v19 = vld [vmem:[#allocation2] sm:$0xff] }
  0x32   :  { %336 = vmatpush3.bf16.xpose.msra.mxu0 %v364_v2  ;;  %v223_v22 = vld [vmem:[#allocation2 + $0x8] sm:$0xff]  ;;  %v230_v57 = vld [vmem:[#allocation3] sm:$0xff] }
  0x33   :  { %337 = vmatprep.subr.bf16.mxu0 %v440_v0  ;;  %v231_v61 = vld [vmem:[#allocation3 + $0x8] sm:$0xff] }
  0x34   :  { %v273_v51 = vld [vmem:[#allocation5] sm:$0xff]  ;;  %v268_v11 = vld [vmem:[#allocation4 + $0x8] sm:$0xff] }
  0x35   :  { %v274_v2 = vld [vmem:[#allocation5 + $0x8] sm:$0xff] }
  0x3a   :  { %338 = vmatpush3.bf16.xpose.msra.mxu0 %v365_v3 }
  0x3b   :  { %339 = vmatprep.subr.bf16.mxu0 %v440_v0 }
  0x42   :  { %340 = vmatpush3.bf16.xpose.msra.mxu0 %v366_v4 }
  0x43   :  { %341 = vmatprep.subr.bf16.mxu0 %v440_v0 }
  0x4a   :  { %342 = vmatpush3.bf16.xpose.msra.mxu0 %v367_v5 }
  0x4b   :  { %343 = vmatprep.subr.bf16.mxu0 %v440_v0 }
  0x52   :  { %344 = vmatpush3.bf16.xpose.msra.mxu0 %v368_v6 }
  0x53   :  { %345 = vmatprep.subr.bf16.mxu0 %v440_v0 }
  0x5a   :  { %346 = vmatpush3.bf16.xpose.msra.mxu0 %v369_v7  ;;  %v267_v7 = vld [vmem:[#allocation4] sm:$0xff] }
  0x5b   :  { %347 = vmatprep.subr.bf16.mxu0 %v440_v0 }
  0x62   :  { %348 = vmatpush3.bf16.xpose.msra.mxu0 %v370_v8 }
  0x69   :  { %350 = vmatmul.mubr.bf16.vlgmr.msra.gmra.mrb[0].mxu0 %v371_v9 }
 0x13c   :  { %v201_v12 = vpop.f32.mrb[0].mxu0 }
 0x13d   :  { %v208_v13 = vmul.f32 14.285714, %v201_v12  ;;  %v351_v14 = vpop.f32.mrb[1].mxu0 }
 0x13e   :  { %v204_v15 = vpop.f32.mrb[2].mxu0 }
 0x13f   :  { %224 = vmax.xlane.f32.xlu0 %v208_v13  ;;  %v352_v16 = vpop.f32.mrb[3].mxu0  ;;  %v209_v17 = vmul.f32 14.285714, %v204_v15 }
 0x143   :  { %226 = vmax.xlane.f32.xlu0 %v209_v17 }
 0x159   :  { %82 = vperm.xlu0 %362, %v78_v18  }
 0x1cc   :  { %v225_v20 = vpop.xlane.xlu0 %224 }
 0x1cd   :  { %v228_v21 = vmax.f32 %v222_v19, %v225_v20 }
 0x1cf   :  { %v232_v23 = vsub.f32 %v222_v19, %v228_v21  ;;  %279 = vst.msk [vmem:[#allocation2] sm:$0xff] %vm50_vm1, %v228_v21  ;;  %242 = vperm.xlu1 %361, %v228_v21  }
 0x1d0   :  { %v227_v24 = vpop.xlane.xlu0 %226 }
 0x1d1   :  { %v229_v26 = vmax.f32 %v223_v22, %v227_v24  ;;  %v234_v54 = vmul.f32 1.442695, %v232_v23 }
 0x1d3   :  { %v233_v27 = vsub.f32 %v223_v22, %v229_v26  ;;  %280 = vst.msk [vmem:[#allocation2 + $0x8] sm:$0xff] %vm50_vm1, %v229_v26  ;;  %247 = vperm.xlu1 %361, %v229_v26  }
 0x1d5   :  { %v236_v55 = vmul.f32 1.442695, %v233_v27 }
 0x1d6   :  { %v284_v19 = vld [vmem:[#allocation2] sm:$0xff] }
 0x1d7   :  { %85 = vperm.xlu1 %361, %v79_v28  }
 0x1d8   :  { %v83_v32 = vpop.permute.xlu0 %82 }
 0x1d9   :  { %vm91_vm4 = vcmp.eq.s32.totalorder %v83_v32, %v314_v31 }
 0x1da   :  { %vm537_vm6 = vmand %vm91_vm4, %vm531_vm5  ;;  %v285_v27 = vld [vmem:[#allocation2 + $0x8] sm:$0xff] }
 0x1db   :  { %v216_v35 = vsel %vm537_vm6, 1.0, %v440_v0  ;;  %v210_v49 = vsel %vm537_vm6, %v208_v13, 0.0 }
 0x1dc   :  { %218 = vadd.xlane.f32.xlu0 %v216_v35 }
 0x24e   :  { %v243_v36 = vpop.permute.xlu1 %242 }
 0x24f   :  { %v250_v37 = vsub.f32 %v208_v13, %v243_v36 }
 0x251   :  { %v252_v38 = vmul.f32 1.442695, %v250_v37 }
 0x252   :  { %v248_v39 = vpop.permute.xlu1 %247 }
 0x253   :  { %372 = vpow2.f32 %v252_v38  ;;  %v251_v40 = vsub.f32 %v209_v17, %v248_v39 }
 0x255   :  { %v254_v41 = vmul.f32 1.442695, %v251_v40 }
 0x256   :  { %v86_v44 = vpop.permute.xlu1 %85 }
 0x257   :  { %374 = vpow2.f32 %v254_v41  ;;  %vm92_vm8 = vcmp.eq.s32.totalorder %v86_v44, %v314_v31 }
 0x258   :  { %vm94_vm10 = vmand %vm92_vm8, %vm77_vm9  ;;  %376 = vpow2.f32 %v234_v54 }
 0x259   :  { %v217_v48 = vsel %vm94_vm10, 1.0, %v440_v0  ;;  %v211_v52 = vsel %vm94_vm10, %v209_v17, 0.0  ;;  %378 = vpow2.f32 %v236_v55 }
 0x25d   :  { %v373_v43 = vpop.eup %372 }
 0x25e   :  { %v256_v45 = vsel %vm531_vm5, %v373_v43, 0.0 }
 0x25f   :  { %258 = vadd.xlane.f32.xlu1 %v256_v45 }
 0x261   :  { %v375_v46 = vpop.eup %374 }
 0x262   :  { %v257_v47 = vsel %vm77_vm9, %v375_v46, 0.0  ;;  %v377_v56 = vpop.eup %376 }
 0x263   :  { %260 = vadd.xlane.f32.xlu1 %v257_v47  ;;  %v238_v58 = vmul.f32 %v377_v56, %v230_v57  ;;  %v379_v59 = vpop.eup %378 }
 0x264   :  { %v239_v63 = vmul.f32 %v379_v59, %v231_v61 }
 0x267   :  { %220 = vadd.xlane.f32.xlu1 %v217_v48 }
 0x269   :  { %v219_v50 = vpop.xlane.xlu0 %218 }
 0x26a   :  { %v275_v53 = vadd.f32 %v273_v51, %v219_v50 }
 0x26b   :  { %212 = vadd.xlane.f32.xlu1 %v210_v49 }
 0x26c   :  { %277 = vst.msk [vmem:[#allocation5] sm:$0xff] %vm50_vm1, %v275_v53 }
 0x26f   :  { %214 = vadd.xlane.f32.xlu1 %v211_v52 }
 0x273   :  { %v296_v3 = vld [vmem:[#allocation5] sm:$0xff] }
 0x274   :  { %380 = vrcp.f32 %v296_v3 }
 0x27e   :  { %v381_v15 = vpop.eup %380 }
 0x2ec   :  { %v259_v60 = vpop.xlane.xlu1 %258 }
 0x2ed   :  { %v262_v62 = vadd.f32 %v259_v60, %v238_v58 }
 0x2ef   :  { %265 = vst.msk [vmem:[#allocation3] sm:$0xff] %vm50_vm1, %v262_v62 }
 0x2f0   :  { %v261_v0 = vpop.xlane.xlu1 %260 }
 0x2f1   :  { %v263_v1 = vadd.f32 %v261_v0, %v239_v63 }
 0x2f3   :  { %266 = vst.msk [vmem:[#allocation3 + $0x8] sm:$0xff] %vm50_vm1, %v263_v1 }
 0x2f4   :  { %v221_v4 = vpop.xlane.xlu1 %220 }
 0x2f5   :  { %v276_v5 = vadd.f32 %v274_v2, %v221_v4 }
 0x2f6   :  { %v286_v6 = vld [vmem:[#allocation3] sm:$0xff] }
 0x2f7   :  { %382 = vlog2.f32 %v286_v6  ;;  %278 = vst.msk [vmem:[#allocation5 + $0x8] sm:$0xff] %vm50_vm1, %v276_v5 }
 0x2f8   :  { %v213_v8 = vpop.xlane.xlu1 %212 }
 0x2f9   :  { %v269_v9 = vadd.f32 %v267_v7, %v213_v8 }
 0x2fa   :  { %v287_v10 = vld [vmem:[#allocation3 + $0x8] sm:$0xff] }
 0x2fb   :  { %384 = vlog2.f32 %v287_v10  ;;  %271 = vst.msk [vmem:[#allocation4] sm:$0xff] %vm50_vm1, %v269_v9 }
 0x2fc   :  { %v215_v12 = vpop.xlane.xlu1 %214 }
 0x2fd   :  { %v270_v13 = vadd.f32 %v268_v11, %v215_v12 }
 0x2fe   :  { %v297_v14 = vld [vmem:[#allocation5 + $0x8] sm:$0xff] }
 0x2ff   :  { %386 = vrcp.f32 %v297_v14  ;;  %272 = vst.msk [vmem:[#allocation4 + $0x8] sm:$0xff] %vm50_vm1, %v270_v13 }
 0x301   :  { %v383_v16 = vpop.eup %382 }
 0x302   :  { %v289_v17 = vmul.f32 0.6931472, %v383_v16  ;;  %v294_v18 = vld [vmem:[#allocation4] sm:$0xff] }
 0x303   :  { %v299_v20 = vmul.f32 %v381_v15, %v294_v18 }
 0x304   :  { %v292_v21 = vadd.f32 %v289_v17, %v284_v19 }
 0x305   :  { %v385_v22 = vpop.eup %384 }
 0x306   :  { %v291_v23 = vmul.f32 0.6931472, %v385_v22  ;;  %v302_v24 = vsub.f32 %v299_v20, %v292_v21  ;;  %v295_v28 = vld [vmem:[#allocation4 + $0x8] sm:$0xff] }
 0x308   :  { %v304_v25 = vmul.f32 -1.0, %v302_v24  ;;  %v293_v29 = vadd.f32 %v291_v23, %v285_v27 }
 0x309   :  { %v387_v26 = vpop.eup %386 }
 0x30a   :  { %306 = vst.msk [vmem:[%s568_s4] sm:$0xff] %vm50_vm1, %v304_v25  ;;  %v301_v30 = vmul.f32 %v387_v26, %v295_v28 }
 0x30c   :  { %v303_v31 = vsub.f32 %v301_v30, %v293_v29 }
 0x30e   :  { %v305_v32 = vmul.f32 -1.0, %v303_v31 }
 0x310   :  { %307 = vst.msk [vmem:[%s568_s4 + $0x8] sm:$0xff] %vm50_vm1, %v305_v32 }
 0x311   :  { %312 = vsyncpa [#allocation7], 1 }
 0x312   :  { %313 = vsyncpa [#allocation9], 1 }

</bundles_post_ra>
